<compile_context>
chip_gen: v7x
topology: tpu7x:2x2x1
jax: 0.10.0
libtpu: 0.0.40
codegen_flags: <defaults>
</compile_context>

<pallas_src>
import functools

import jax
import jax.numpy as jnp
from jax import lax
from jax.experimental import pallas as pl
from jax.experimental.pallas import tpu as pltpu


def _round_up(x, m):
    return (x + m - 1) // m * m


def _pick_block_b(batch, num_classes, itemsize):
    # Keep a (double-buffered) logits tile comfortably inside scoped VMEM:
    # target ~4 MiB of f32-equivalent logits per tile, rows in multiples of 8.
    budget = 4 << 20
    tb = (budget // (num_classes * max(int(itemsize), 4))) // 8 * 8
    tb = max(8, min(512, tb))
    return min(tb, _round_up(batch, 8))


def _ce_ls_kernel(logits_ref, targets_ref, out_ref, *, epsilon, num_classes,
                  batch, block_b, reduction):
    # logits_ref : (TB, C) input dtype (kept narrow in VMEM; upcast per-tile)
    # targets_ref: (TB, 1) int32
    x = logits_ref[...].astype(jnp.float32)

    # Numerically-stable logsumexp along classes.
    m = jnp.max(x, axis=1, keepdims=True)
    lse = jnp.log(jnp.sum(jnp.exp(x - m), axis=1, keepdims=True)) + m   # (TB, 1)

    # x[target] via iota-compare + select + row reduce (no onehot materialized).
    cls_ids = lax.broadcasted_iota(jnp.int32, x.shape, 1)               # (TB, C)
    x_tgt = jnp.sum(jnp.where(cls_ids == targets_ref[...], x, 0.0),
                    axis=1, keepdims=True)                              # (TB, 1)
    sum_x = jnp.sum(x, axis=1, keepdims=True)                           # (TB, 1)

    # loss_i = lse_i - (1-eps)*x_target_i - (eps/C)*sum_c x_ic
    loss = lse - (1.0 - epsilon) * x_tgt - (epsilon / num_classes) * sum_x

    if reduction:
        # Mask rows past the true batch (padding), emit this tile's partial sum.
        row = (pl.program_id(0) * block_b
               + lax.broadcasted_iota(jnp.int32, (block_b, 1), 0))
        loss = jnp.where(row < batch, loss, 0.0)
        out_ref[...] = jnp.sum(loss, keepdims=True)                     # (1, 1)
    else:
        # TODO(synk): for tiny C + reduction=False a lane-dense (1, TB) output
        # layout would avoid masked vst.msk stores; kept (TB, 1) for robustness.
        out_ref[...] = loss


def cross_entropy_label_smooth(inputs, targets, *, num_classes, epsilon=0.1,
                               reduction=True, block_b=None):
    """inputs: (B, num_classes) logits; targets: (B,) int class indices."""
    B, C = inputs.shape
    assert C == num_classes
    itemsize = jnp.dtype(inputs.dtype).itemsize

    if block_b is None:
        block_b = _pick_block_b(B, C, itemsize)
    block_b = max(8, _round_up(min(block_b, _round_up(B, 8)), 8))
    padded_b = _round_up(B, block_b)
    num_tiles = padded_b // block_b

    x = inputs
    t = targets.astype(jnp.int32).reshape(B, 1)
    if padded_b != B:
        x = jnp.pad(x, ((0, padded_b - B), (0, 0)))
        t = jnp.pad(t, ((0, padded_b - B), (0, 0)))

    kernel = functools.partial(_ce_ls_kernel,
                               epsilon=float(epsilon),
                               num_classes=num_classes,
                               batch=B,
                               block_b=block_b,
                               reduction=reduction)

    if reduction:
        out_sds = jax.ShapeDtypeStruct((num_tiles, 1), jnp.float32)
        out_spec = pl.BlockSpec((1, 1), lambda i: (i, 0))
        out_bytes = num_tiles * 4
    else:
        out_sds = jax.ShapeDtypeStruct((padded_b, 1), jnp.float32)
        out_spec = pl.BlockSpec((block_b, 1), lambda i: (i, 0))
        out_bytes = padded_b * 4

    tile_bytes = block_b * C * itemsize
    # Enough for double-buffered inputs + f32 temporaries, capped below v7x's
    # 64 MiB physical VMEM (and well inside v5e/v6e's 128 MiB).
    vmem_limit = int(min(max(32 << 20, 6 * tile_bytes + (4 << 20)), 56 << 20))

    out = pl.pallas_call(
        kernel,
        out_shape=out_sds,
        grid=(num_tiles,),
        in_specs=[
            pl.BlockSpec((block_b, C), lambda i: (i, 0)),   # logits tile
            pl.BlockSpec((block_b, 1), lambda i: (i, 0)),   # targets tile
        ],
        out_specs=out_spec,
        compiler_params=pltpu.CompilerParams(
            dimension_semantics=("parallel",),
            vmem_limit_bytes=vmem_limit,
        ),
        cost_estimate=pl.CostEstimate(
            flops=6 * padded_b * C,
            transcendentals=padded_b * C,
            bytes_accessed=padded_b * C * itemsize + padded_b * 4 + out_bytes,
        ),
    )(x, t)

    if reduction:
        return jnp.sum(out) / B
    return out[:B, 0]


def _reference(inputs, targets, num_classes, epsilon=0.1, reduction=True):
    # Pure-JAX reference mirroring the PyTorch forward.
    log_probs = jax.nn.log_softmax(inputs.astype(jnp.float32), axis=1)
    onehot = jax.nn.one_hot(targets, num_classes, dtype=jnp.float32)
    smooth = (1.0 - epsilon) * onehot + epsilon / num_classes
    loss = jnp.sum(-smooth * log_probs, axis=1)
    return jnp.mean(loss) if reduction else loss


if __name__ == "__main__":
    num_classes = 16
    batch = 8
    epsilon = 0.1

    key = jax.random.PRNGKey(0)
    k_logits, k_targets = jax.random.split(key)
    logits = jax.random.normal(k_logits, (batch, num_classes), dtype=jnp.float32)
    targets = jax.random.randint(k_targets, (batch,), 0, num_classes, dtype=jnp.int32)

    loss = cross_entropy_label_smooth(logits, targets,
                                      num_classes=num_classes,
                                      epsilon=epsilon,
                                      reduction=True)
    loss = jax.block_until_ready(loss)

    per_sample = cross_entropy_label_smooth(logits, targets,
                                            num_classes=num_classes,
                                            epsilon=epsilon,
                                            reduction=False)
    per_sample = jax.block_until_ready(per_sample)

    ref_mean = _reference(logits, targets, num_classes, epsilon, reduction=True)
    ref_per = _reference(logits, targets, num_classes, epsilon, reduction=False)
    assert jnp.allclose(loss, ref_mean, atol=1e-5, rtol=1e-5), (loss, ref_mean)
    assert jnp.allclose(per_sample, ref_per, atol=1e-5, rtol=1e-5), (per_sample, ref_per)

    print("KERNEL_OK")
</pallas_src>

<mosaic_0001>
module attributes {stable_mosaic.version = 11 : i64} {
  func.func @_ce_ls_kernel(%arg0: i32, %arg1: memref<8x16xf32, #tpu.memory_space<vmem>>, %arg2: memref<8x1xi32, #tpu.memory_space<vmem>>, %arg3: memref<1x1xf32, #tpu.memory_space<vmem>>) attributes {dimension_semantics = [#tpu.dimension_semantics<parallel>], iteration_bounds = array<i64: 1>, scalar_prefetch = 0 : i64, scratch_operands = 0 : i64, tpu.core_type = #tpu.core_type<tc>, window_params = [{transform_indices = @transform_0, window_bounds = array<i64: 8, 16>}, {transform_indices = @transform_1, window_bounds = array<i64: 8, 1>}, {transform_indices = @transform_2, window_bounds = array<i64: 1, 1>}]} {
    %c0 = arith.constant 0 : index
    %c0_0 = arith.constant 0 : index
    %0 = vector.load %arg1[%c0, %c0_0] : memref<8x16xf32, #tpu.memory_space<vmem>>, vector<8x16xf32>
    %cst = arith.constant dense<0xFF800000> : vector<8xf32>
    %1 = vector.multi_reduction <maximumf>, %0, %cst [1] : vector<8x16xf32> to vector<8xf32>
    %2 = vector.shape_cast %1 : vector<8xf32> to vector<8x1xf32>
    %3 = vector.broadcast %2 : vector<8x1xf32> to vector<8x16xf32>
    %4 = arith.subf %0, %3 : vector<8x16xf32>
    %5 = math.exp %4 : vector<8x16xf32>
    %cst_1 = arith.constant dense<0.000000e+00> : vector<8xf32>
    %6 = vector.multi_reduction <add>, %5, %cst_1 [1] : vector<8x16xf32> to vector<8xf32>
    %7 = vector.shape_cast %6 : vector<8xf32> to vector<8x1xf32>
    %8 = math.log %7 : vector<8x1xf32>
    %9 = arith.addf %8, %2 : vector<8x1xf32>
    %10 = tpu.iota {dimensions = array<i32: 1>} : vector<8x16xi32>
    %c0_2 = arith.constant 0 : index
    %c0_3 = arith.constant 0 : index
    %11 = vector.load %arg2[%c0_2, %c0_3] : memref<8x1xi32, #tpu.memory_space<vmem>>, vector<8x1xi32>
    %12 = vector.broadcast %11 : vector<8x1xi32> to vector<8x16xi32>
    %13 = arith.cmpi eq, %10, %12 : vector<8x16xi32>
    %cst_4 = arith.constant 0.000000e+00 : f32
    %14 = vector.broadcast %cst_4 : f32 to vector<8x16xf32>
    %15 = arith.select %13, %0, %14 : vector<8x16xi1>, vector<8x16xf32>
    %cst_5 = arith.constant dense<0.000000e+00> : vector<8xf32>
    %16 = vector.multi_reduction <add>, %15, %cst_5 [1] : vector<8x16xf32> to vector<8xf32>
    %17 = vector.shape_cast %16 : vector<8xf32> to vector<8x1xf32>
    %cst_6 = arith.constant dense<0.000000e+00> : vector<8xf32>
    %18 = vector.multi_reduction <add>, %0, %cst_6 [1] : vector<8x16xf32> to vector<8xf32>
    %19 = vector.shape_cast %18 : vector<8xf32> to vector<8x1xf32>
    %cst_7 = arith.constant 0.899999976 : f32
    %20 = vector.broadcast %cst_7 : f32 to vector<8x1xf32>
    %21 = arith.mulf %20, %17 : vector<8x1xf32>
    %22 = arith.subf %9, %21 : vector<8x1xf32>
    %cst_8 = arith.constant 6.250000e-03 : f32
    %23 = vector.broadcast %cst_8 : f32 to vector<8x1xf32>
    %24 = arith.mulf %23, %19 : vector<8x1xf32>
    %25 = arith.subf %22, %24 : vector<8x1xf32>
    %c8_i32 = arith.constant 8 : i32
    %26 = arith.muli %arg0, %c8_i32 : i32
    %27 = tpu.iota {dimensions = array<i32: 0>} : vector<8x1xi32>
    %28 = vector.broadcast %26 : i32 to vector<8x1xi32>
    %29 = arith.addi %28, %27 : vector<8x1xi32>
    %c8_i32_9 = arith.constant 8 : i32
    %30 = vector.broadcast %c8_i32_9 : i32 to vector<8x1xi32>
    %31 = arith.cmpi slt, %29, %30 : vector<8x1xi32>
    %cst_10 = arith.constant 0.000000e+00 : f32
    %32 = vector.broadcast %cst_10 : f32 to vector<8x1xf32>
    %33 = arith.select %31, %25, %32 : vector<8x1xi1>, vector<8x1xf32>
    %34 = vector.shape_cast %33 : vector<8x1xf32> to vector<1x8x1xf32>
    %cst_11 = arith.constant dense<0.000000e+00> : vector<1xf32>
    %35 = vector.multi_reduction <add>, %34, %cst_11 [1, 2] : vector<1x8x1xf32> to vector<1xf32>
    %36 = vector.shape_cast %35 : vector<1xf32> to vector<1x1x1xf32>
    %37 = vector.extract %36[0, 0, 0] : f32 from vector<1x1x1xf32>
    %38 = vector.broadcast %37 : f32 to vector<1x1xf32>
    %c0_12 = arith.constant 0 : index
    %c0_13 = arith.constant 0 : index
    %39 = vector.load %arg3[%c0_12, %c0_13] : memref<1x1xf32, #tpu.memory_space<vmem>>, vector<1x1xf32>
    tpu.vector_store %arg3[%c0_12, %c0_13], %38 {strides = array<i32>} : memref<1x1xf32, #tpu.memory_space<vmem>>, vector<1x1xf32>,
    return
  }
  func.func @transform_0(%arg0: i32) -> (i32, i32) {
    %c0_i32 = arith.constant 0 : i32
    %c0_i32_0 = arith.constant 0 : i32
    return %arg0, %c0_i32 : i32, i32
  }
  func.func @transform_1(%arg0: i32) -> (i32, i32) {
    %c0_i32 = arith.constant 0 : i32
    %c0_i32_0 = arith.constant 0 : i32
    return %arg0, %c0_i32 : i32, i32
  }
  func.func @transform_2(%arg0: i32) -> (i32, i32) {
    %c0_i32 = arith.constant 0 : i32
    %c0_i32_0 = arith.constant 0 : i32
    return %arg0, %c0_i32 : i32, i32
  }
}

</mosaic_0001>

<bundles_post_ra>
// kernel: tpu_custom_call.1
= control target key start
LH: loop header
LB: loop body
LE: loop exit
PB: predicated region body
PF: predicated region fallthrough
CT: control target
= control target key end

     0   :  { %vm13_vm0 = vcmask 130048   ;;  %s151_s0 = inlined_call_operand.vmem [shape: f32[8,16], index: 0, kind: input, shape index: {}]   ;;  %s152_s1 = inlined_call_operand.vmem [shape: s32[8,1], index: 1, kind: input, shape index: {}]   ;;  %s153_s2 = inlined_call_operand.hbm [shape: f32[1,1], index: 2, kind: output, shape index: {}]  }
   0x1   :  { %v12_v0 = vld [vmem:[%s151_s0] sm:$0xff] }
   0x2   :  { %7 = vsyncpa [#allocation3], 0  ;;  %v14_v1 = vsel %vm13_vm0, %v12_v0, -inf  ;;  %v112_v2 = vmov 0   ;;  %v28_v3 = vld [vmem:[%s152_s1] sm:$0xff]  ;;  %v26_v7 = vlaneseq  ;;  %v37_v14 = vsel %vm13_vm0, %v12_v0, 0.0 }
   0x3   :  { %83 = vset.pattern.permute.xlu0 %v112_v2  ;;  %vm51_vm2 = vcmask 7168   ;;  %s113_s0 = smov [#allocation2]   ;;  %vm63_vm3 = vcmask 0  }
   0x4   :  { %15 = vmax.xlane.f32.xlu0 %v14_v1  ;;  %v27_v8 = vand.u32 127, %v26_v7  ;;  %s71_s1 = sshll.u32 %s113_s0, 4  ;;  %s72_s1 = int_to_ptr.vmem [resolvable:$true] %s71_s1 }
   0x5   :  { %s88_s14 = scalar_lea.vmem %s72_s1, 16  ;;  %s92_s15 = scalar_lea.vmem %s72_s1, 32 }
   0x6   :  { %p89_p0 = scmp.ne.s32.totalorder %s72_s1, %s88_s14  ;;  %p93_p1 = scmp.lt.s32.totalorder %s72_s1, %s72_s1 }
   0x7   :  { %p94_p2 = scmp.lt.s32.totalorder %s92_s15, %s88_s14 }
   0x9   :  { %p95_p3 = por %p94_p2, %p93_p1 }
   0xb   :  { %p96_p4 = pnand %p95_p3, %p89_p0 }
  0x1a   :  { %30 = vperm.xlu0 %83, %v28_v3  }
  0x91   :  { %v16_v4 = vpop.xlane.xlu0 %15 }
  0x92   :  { %v17_v5 = vsub.f32 %v12_v0, %v16_v4 }
  0x94   :  { %v18_v6 = vmul.f32 1.442695, %v17_v5 }
  0x96   :  { %84 = vpow2.f32 %v18_v6 }
  0x99   :  { %v31_v9 = vpop.permute.xlu0 %30 }
  0x9a   :  { %vm32_vm1 = vcmp.eq.s32.totalorder %v27_v8, %v31_v9 }
  0x9b   :  { %v33_v11 = vsel %vm32_vm1, %v12_v0, 0.0 }
  0x9c   :  { %v34_v13 = vsel %vm13_vm0, %v33_v11, 0.0 }
  0xa0   :  { %v85_v10 = vpop.eup %84 }
  0xa1   :  { %v20_v12 = vsel %vm13_vm0, %v85_v10, 0.0 }
  0xa2   :  { %21 = vadd.xlane.f32.xlu1 %v20_v12 }
  0xa6   :  { %35 = vadd.xlane.f32.xlu1 %v34_v13 }
  0xaa   :  { %38 = vadd.xlane.f32.xlu1 %v37_v14 }
 0x12f   :  { %v22_v15 = vpop.xlane.xlu1 %21 }
 0x130   :  { %86 = vlog2.f32 %v22_v15 }
 0x133   :  { %v36_v16 = vpop.xlane.xlu1 %35 }
 0x134   :  { %v40_v21 = vmul.f32 0.9, %v36_v16 }
 0x137   :  { %v39_v18 = vpop.xlane.xlu1 %38 }
 0x138   :  { %v42_v22 = vmul.f32 0.00625, %v39_v18 }
 0x13a   :  { %v87_v17 = vpop.eup %86 }
 0x13b   :  { %v24_v19 = vmul.f32 0.6931472, %v87_v17 }
 0x13d   :  { %v25_v20 = vadd.f32 %v24_v19, %v16_v4 }
 0x13f   :  { %v41_v23 = vsub.f32 %v25_v20, %v40_v21 }
 0x141   :  { %v43_v24 = vsub.f32 %v41_v23, %v42_v22 }
 0x143   :  { %v52_v25 = vsel %vm51_vm2, %v43_v24, 0.0 }
 0x144   :  { %53 = vadd.xlane.f32.xlu1 %v52_v25 }
 0x1d1   :  { %v54_v26 = vpop.xlane.xlu1 %53 }
 0x1d2   :  { %v55_v27 = vrot.slane %v54_v26, 4 }
 0x1d4   :  { %v56_v28 = vadd.f32 %v55_v27, %v54_v26 }
 0x1d6   :  { %v57_v29 = vrot.slane %v56_v28, 2 }
 0x1d8   :  { %v58_v30 = vadd.f32 %v57_v29, %v56_v28 }
 0x1da   :  { %v59_v31 = vrot.slane %v58_v30, 1 }
 0x1dc   :  { %v60_v32 = vadd.f32 %v59_v31, %v58_v30 }
 0x1de   :  { %79 = vpush %v60_v32 }
 0x20f   :  { %s80_s13 = spop %79 }
 0x210   :  { %v62_v33 = vstv %s80_s13 }
 0x211   :  { %64 = vst.msk [vmem:[#allocation2] sm:$0x1] %vm63_vm3, %v62_v33 }
 0x212   :  { %99 = shalt.err (!%p96_p4)
}
 0x213   :  { %s100_s18 = scalar_lea.hbm %s153_s2, 16 }
 0x214   :  { %p101_p5 = scmp.ne.s32.totalorder %s153_s2, %s100_s18  ;;  %p104_p6 = scmp.lt.u32.totalorder %s100_s18, %s153_s2 }
 0x216   :  { %p106_p7 = pnand %p104_p6, %p101_p5 }
 0x218   :  { %109 = shalt.err (!%p106_p7)
}
 0x219   :  { %74 = dma.vmem_to_hbm [thread:$0]  %s72_s1, 16, %s153_s2, [#allocation3]  }
 0x21a   :  { %110 = dma.done.wait [#allocation3], 16  }
 0x21b   :  { %111 = vsyncadd [#allocation3], 4294967280 }
 0x21c   :  { %78 = vsyncpa [#allocation3], 1 }

</bundles_post_ra>
